<compile_context>
chip_gen: v7x
topology: tpu7x:2x2x1
jax: 0.10.0
libtpu: 0.0.40
codegen_flags: <defaults>
</compile_context>

<pallas_src>
import jax
import jax.numpy as jnp
from jax.experimental import pallas as pl
from jax.experimental.pallas import tpu as pltpu

NUM_LABELS = 2
CFC_OFFSET = 0.16     # the `- 0.16` constant in get_cfc (eval_only path)
TILE_B = 512          # rows per grid step (multiple of 8 sublanes)


def _round_up(x, m):
    return ((x + m - 1) // m) * m


# ----------------------------------------------------------------------------
# Pallas kernel (eval_only=True path only; the other path is a no-op reshape)
# ----------------------------------------------------------------------------
def _cfc_eval_kernel(cfc_ref, out_ref):
    # cfc_ref: (tile, 1) f32 ; out_ref: (tile, NUM_LABELS) f32
    s = cfc_ref[...] - CFC_OFFSET                      # (tile, 1)
    out_ref[...] = jnp.concatenate([1.0 - s, s], axis=1)


def _cfc_eval_scores(cfc2d):
    """(B, 1) cfc scores -> (B, NUM_LABELS) eval logits via a tiled Pallas call."""
    b = cfc2d.shape[0]
    tile = min(TILE_B, _round_up(b, 8))                # sublane-multiple tile
    b_pad = _round_up(b, tile)
    x = cfc2d if b_pad == b else jnp.pad(cfc2d, ((0, b_pad - b), (0, 0)))

    out = pl.pallas_call(
        _cfc_eval_kernel,
        out_shape=jax.ShapeDtypeStruct((b_pad, NUM_LABELS), jnp.float32),
        grid=(b_pad // tile,),
        in_specs=[pl.BlockSpec((tile, 1), lambda i: (i, 0))],
        out_specs=pl.BlockSpec((tile, NUM_LABELS), lambda i: (i, 0)),
        compiler_params=pltpu.CompilerParams(
            dimension_semantics=("parallel",)),        # shards across TCs on v7x
    )(x)
    return out[:b] if b_pad != b else out


# ----------------------------------------------------------------------------
# Forward wrapper (matches CredibilityClassifierCfc.forward semantics)
# ----------------------------------------------------------------------------
def credibility_classifier_cfc_forward(input_ids, token_type_ids,
                                       attention_mask, labels, *,
                                       cfc, eval_only=False):
    del input_ids, token_type_ids, attention_mask      # unused by this forward
    b = cfc.shape[0]
    cfc2d = cfc.astype(jnp.float32).reshape(b, 1)      # .unsqueeze(dim=1)

    if eval_only:
        out = _cfc_eval_scores(cfc2d)
    else:
        # Pure identity pass-through: reshape is metadata-only, no kernel
        # launch, no HBM<->VMEM round trip.
        out = cfc2d

    return out, labels


# ----------------------------------------------------------------------------
# Main
# ----------------------------------------------------------------------------
if __name__ == "__main__":
    key = jax.random.PRNGKey(0)
    k1, k2, k3, k4 = jax.random.split(key, 4)

    B, S = 2, 8
    input_ids = jax.random.randint(k1, (B, S), 0, 100, dtype=jnp.int32)
    token_type_ids = jnp.zeros((B, S), dtype=jnp.int32)
    attention_mask = jnp.ones((B, S), dtype=jnp.int32)
    labels = jax.random.randint(k2, (B, NUM_LABELS), 0, 2).astype(jnp.float32)
    cfc = jax.random.uniform(k3, (B,), jnp.float32)    # per-example cfc score

    # eval_only=False path (module default): returns cfc.unsqueeze(1), labels
    out_train, lab_train = credibility_classifier_cfc_forward(
        input_ids, token_type_ids, attention_mask, labels,
        cfc=cfc, eval_only=False)
    jax.block_until_ready(out_train)
    assert out_train.shape == (B, 1)
    assert jnp.allclose(out_train[:, 0], cfc)
    assert jnp.array_equal(lab_train, labels)

    # eval_only=True path: [1 - (cfc - 0.16), cfc - 0.16]
    out_eval, lab_eval = credibility_classifier_cfc_forward(
        input_ids, token_type_ids, attention_mask, labels,
        cfc=cfc, eval_only=True)
    jax.block_until_ready(out_eval)
    ref = jnp.stack([1.0 - (cfc - CFC_OFFSET), cfc - CFC_OFFSET], axis=1)
    assert out_eval.shape == (B, NUM_LABELS)
    assert jnp.allclose(out_eval, ref, atol=1e-6)
    assert jnp.array_equal(lab_eval, labels)

    # Exercise the padded / tiled path (B not a multiple of 8).
    B2 = 300
    cfc2 = jax.random.uniform(k4, (B2,), jnp.float32)
    labels2 = jnp.zeros((B2, NUM_LABELS), jnp.float32)
    out_eval2, _ = credibility_classifier_cfc_forward(
        jnp.zeros((B2, S), jnp.int32), jnp.zeros((B2, S), jnp.int32),
        jnp.ones((B2, S), jnp.int32), labels2, cfc=cfc2, eval_only=True)
    jax.block_until_ready(out_eval2)
    ref2 = jnp.stack([1.0 - (cfc2 - CFC_OFFSET), cfc2 - CFC_OFFSET], axis=1)
    assert out_eval2.shape == (B2, NUM_LABELS)
    assert jnp.allclose(out_eval2, ref2, atol=1e-6)

    print("KERNEL_OK")
</pallas_src>

<mosaic_0001>
module attributes {stable_mosaic.version = 11 : i64} {
  func.func @_cfc_eval_kernel(%arg0: i32, %arg1: memref<8x1xf32, #tpu.memory_space<vmem>>, %arg2: memref<8x2xf32, #tpu.memory_space<vmem>>) attributes {dimension_semantics = [#tpu.dimension_semantics<parallel>], iteration_bounds = array<i64: 1>, scalar_prefetch = 0 : i64, scratch_operands = 0 : i64, tpu.core_type = #tpu.core_type<tc>, window_params = [{transform_indices = @transform_0, window_bounds = array<i64: 8, 1>}, {transform_indices = @transform_1, window_bounds = array<i64: 8, 2>}]} {
    %c0 = arith.constant 0 : index
    %c0_0 = arith.constant 0 : index
    %0 = vector.load %arg1[%c0, %c0_0] : memref<8x1xf32, #tpu.memory_space<vmem>>, vector<8x1xf32>
    %cst = arith.constant 1.600000e-01 : f32
    %1 = vector.broadcast %cst : f32 to vector<8x1xf32>
    %2 = arith.subf %0, %1 : vector<8x1xf32>
    %cst_1 = arith.constant 1.000000e+00 : f32
    %3 = vector.broadcast %cst_1 : f32 to vector<8x1xf32>
    %4 = arith.subf %3, %2 : vector<8x1xf32>
    %5 = tpu.concatenate %4, %2 in 1 : vector<8x1xf32>, vector<8x1xf32> -> vector<8x2xf32>
    %c0_2 = arith.constant 0 : index
    %c0_3 = arith.constant 0 : index
    %6 = vector.load %arg2[%c0_2, %c0_3] : memref<8x2xf32, #tpu.memory_space<vmem>>, vector<8x2xf32>
    tpu.vector_store %arg2[%c0_2, %c0_3], %5 {strides = array<i32>} : memref<8x2xf32, #tpu.memory_space<vmem>>, vector<8x2xf32>,
    return
  }
  func.func @transform_0(%arg0: i32) -> (i32, i32) {
    %c0_i32 = arith.constant 0 : i32
    %c0_i32_0 = arith.constant 0 : i32
    return %arg0, %c0_i32 : i32, i32
  }
  func.func @transform_1(%arg0: i32) -> (i32, i32) {
    %c0_i32 = arith.constant 0 : i32
    %c0_i32_0 = arith.constant 0 : i32
    return %arg0, %c0_i32 : i32, i32
  }
}

</mosaic_0001>

<bundles_post_ra>
// kernel: tpu_custom_call.1
= control target key start
LH: loop header
LB: loop body
LE: loop exit
PB: predicated region body
PF: predicated region fallthrough
CT: control target
= control target key end

     0   :  { %s25_s8 = smov 1   ;;  %vm15_vm0 = vcmask 7168   ;;  %vm17_vm1 = vcmask 15360   ;;  %s42_s0 = inlined_call_operand.vmem [shape: f32[8,1], index: 0, kind: input, shape index: {}]   ;;  %s43_s1 = inlined_call_operand.vmem [shape: f32[8,2], index: 1, kind: output, shape index: {}]  }
   0x1   :  { %v8_v0 = vld [vmem:[%s42_s0] sm:$0xff] }
   0x2   :  { %v23_v1 = vadd.f32 -0.16, %v8_v0 }
   0x4   :  { %12 = vrot.lane.b32.xlu0 %v23_v1, %s25_s8  ;;  %v10_v2 = vsub.f32 1.0, %v23_v1 }
  0x76   :  { %v13_v3 = vpop.permute.xlu0 %12 }
  0x77   :  { %v16_v4 = vsel %vm15_vm0, %v10_v2, %v13_v3 }
  0x78   :  { %18 = vst.msk [vmem:[%s43_s1] sm:$0xff] %vm17_vm1, %v16_v4 }

</bundles_post_ra>
